<compile_context>
chip_gen: v7x
topology: tpu7x:2x2x1
jax: 0.10.0
libtpu: 0.0.40
codegen_flags: <defaults>
</compile_context>

<pallas_src>
import jax
import jax.numpy as jnp
from jax.experimental import pallas as pl
from jax.experimental.pallas import tpu as pltpu


def _layernorm(y, gamma, beta, eps=1e-6):
    mu = jnp.mean(y, axis=-1, keepdims=True)
    var = jnp.mean(jnp.square(y - mu), axis=-1, keepdims=True)
    return (y - mu) * jax.lax.rsqrt(var + eps) * gamma + beta


def _bridge_kernel(len_ref,                                    # SMEM (B,) int32 (prefetched)
                   x_ref,                                      # (Bt, L, H) bf16
                   w1_ref, b1_ref, w2_ref, b2_ref, g1_ref, be1_ref,
                   wf1_ref, bf1_ref, wf2_ref, bf2_ref, g2_ref, be2_ref,
                   out_ref,                                    # (Bt*R, H) f32
                   att_ref):                                   # VMEM scratch (Bt*R, H) f32
    Bt, L, H = x_ref.shape
    R = w2_ref.shape[1]
    g = pl.program_id(0)

    x = x_ref[...]                                             # (Bt, L, H) bf16
    x2d = x.reshape(Bt * L, H)                                 # flatten batch for the MXU

    # ---- LinAttentionBridgeLayer -------------------------------------------
    # hbar = relu(x @ W1 + b1);  scores = hbar @ W2 + b2   (all batch rows at once)
    hbar = jnp.dot(x2d, w1_ref[...], preferred_element_type=jnp.float32) + b1_ref[...]
    hbar = jnp.maximum(hbar, 0.0)                                          # (Bt*L, U) f32
    scores = jnp.dot(hbar.astype(jnp.bfloat16), w2_ref[...],
                     preferred_element_type=jnp.float32) + b2_ref[...]     # (Bt*L, R) f32

    # Per-batch: additive mask penalty, softmax over keys (axis 0 == L, no transpose),
    # and weighted sum where the MXU absorbs the transpose.  Bt is a tiny static
    # constant, so this Python loop is unrolled at trace time.
    pos = jax.lax.broadcasted_iota(jnp.int32, (L, 1), 0)       # key positions along L
    for b in range(Bt):
        sc = scores[b * L:(b + 1) * L, :]                      # (L, R)
        # padded keys (pos >= length) get -10000, matching `alphas + -10000*(mask==1)`
        sc = sc + jnp.where(pos >= len_ref[g * Bt + b], -10000.0, 0.0)
        sc = sc - jnp.max(sc, axis=0, keepdims=True)           # stable softmax over L
        e = jnp.exp(sc)
        al = e / jnp.sum(e, axis=0, keepdims=True)             # (L, R) f32
        # out1_b[r, h] = sum_l al[l, r] * x[b, l, h]
        att_ref[b * R:(b + 1) * R, :] = jax.lax.dot_general(
            al.astype(jnp.bfloat16), x[b],
            dimension_numbers=(((0,), (0,)), ((), ())),        # contract L with L
            preferred_element_type=jnp.float32)                # (R, H) f32

    # LayerNorm(H, eps=1e-6) over the assembled (Bt*R, H) slab
    out1 = _layernorm(att_ref[...], g1_ref[...], be1_ref[...])

    # ---- FeedForwardAttentionBridgeLayer (flattened over batch*heads) ------
    h = jnp.dot(out1.astype(jnp.bfloat16), wf1_ref[...],
                preferred_element_type=jnp.float32) + bf1_ref[...]
    h = jnp.maximum(h, 0.0)
    out2 = jnp.dot(h.astype(jnp.bfloat16), wf2_ref[...],
                   preferred_element_type=jnp.float32) + bf2_ref[...]
    out_ref[...] = _layernorm(out2, g2_ref[...], be2_ref[...]).astype(out_ref.dtype)


def attention_bridge_forward(enc_output, mask, params, *, batch_block=None):
    """enc_output: (S, B, H) float32, mask: (B, 1, S) bool (True == padded key).

    Returns (out, alphas) matching AttentionBridge.forward for this layer stack:
      out: (R, B, H); alphas: None (last layer is FeedForward).
    """
    S, B, H = enc_output.shape
    L = S
    U = params["w1"].shape[1]
    R = params["w2"].shape[1]
    FF = params["wf1"].shape[1]

    # Block several batch elements per grid step (here all of them -> grid=(1,)).
    Bt = B if batch_block is None else batch_block
    assert B % Bt == 0, "batch_block must divide the batch size"
    num_blocks = B // Bt

    # Batch-major layout with features on lanes; bf16 MXU operands, f32 accumulation.
    x = jnp.transpose(enc_output, (1, 0, 2)).astype(jnp.bfloat16)          # (B, L, H)
    # Valid-key counts per batch element (mask is a padding mask: True == padded).
    lengths = jnp.sum(jnp.logical_not(mask.reshape(B, L)), axis=-1).astype(jnp.int32)

    bf16 = jnp.bfloat16
    w1 = params["w1"].astype(bf16)
    w2 = params["w2"].astype(bf16)
    wf1 = params["wf1"].astype(bf16)
    wf2 = params["wf2"].astype(bf16)

    def const_spec(*shape):
        # weights / biases: same (0, ...) block every grid step
        return pl.BlockSpec(shape, lambda g, lens: (0,) * len(shape))

    out_2d = pl.pallas_call(
        _bridge_kernel,
        out_shape=jax.ShapeDtypeStruct((B * R, H), jnp.float32),
        grid_spec=pltpu.PrefetchScalarGridSpec(
            num_scalar_prefetch=1,                    # lengths -> SMEM
            grid=(num_blocks,),
            in_specs=[
                pl.BlockSpec((Bt, L, H), lambda g, lens: (g, 0, 0)),   # x
                const_spec(H, U),    # w1
                const_spec(1, U),    # b1
                const_spec(U, R),    # w2
                const_spec(1, R),    # b2
                const_spec(1, H),    # layernorm1 gamma
                const_spec(1, H),    # layernorm1 beta
                const_spec(H, FF),   # wf1
                const_spec(1, FF),   # bf1
                const_spec(FF, H),   # wf2
                const_spec(1, H),    # bf2
                const_spec(1, H),    # layernorm2 gamma
                const_spec(1, H),    # layernorm2 beta
            ],
            out_specs=pl.BlockSpec((Bt * R, H), lambda g, lens: (g, 0)),
            scratch_shapes=[pltpu.VMEM((Bt * R, H), jnp.float32)],
        ),
        compiler_params=pltpu.CompilerParams(
            dimension_semantics=("parallel",)),
    )(lengths, x,
      w1, params["b1"], w2, params["b2"], params["g1"], params["be1"],
      wf1, params["bf1"], wf2, params["bf2"], params["g2"], params["be2"])

    out = out_2d.reshape(B, R, H).transpose(1, 0, 2)   # (R, B, H), as in the module
    return out, None   # last layer is FeedForward -> alphas = None


def _reference_forward(enc_output, mask, p):
    """Pure-JAX reference mirroring the PyTorch module (bf16 MXU inputs, f32 accum)."""
    bf16 = jnp.bfloat16
    x = jnp.transpose(enc_output, (1, 0, 2))                    # (B, L, H)
    B, L, H = x.shape
    xb = x.astype(bf16)
    hbar = jax.nn.relu(jnp.dot(xb.reshape(-1, H), p["w1"].astype(bf16),
                               preferred_element_type=jnp.float32) + p["b1"])
    scores = (jnp.dot(hbar.astype(bf16), p["w2"].astype(bf16),
                      preferred_element_type=jnp.float32) + p["b2"]).reshape(B, L, -1)
    al = jnp.transpose(scores, (0, 2, 1))                       # (B, R, L)
    al = al + (-10000.0) * mask.reshape(B, 1, L).astype(jnp.float32)
    al = jax.nn.softmax(al, axis=-1)
    out = jnp.einsum("brl,blh->brh", al.astype(bf16), xb,
                     preferred_element_type=jnp.float32)

    def ln(y, g, b):
        mu = jnp.mean(y, axis=-1, keepdims=True)
        var = jnp.mean((y - mu) ** 2, axis=-1, keepdims=True)
        return (y - mu) * jax.lax.rsqrt(var + 1e-6) * g + b

    out = ln(out, p["g1"], p["be1"])
    h = jax.nn.relu(jnp.dot(out.astype(bf16), p["wf1"].astype(bf16),
                            preferred_element_type=jnp.float32) + p["bf1"])
    out = ln(jnp.dot(h.astype(bf16), p["wf2"].astype(bf16),
                     preferred_element_type=jnp.float32) + p["bf2"], p["g2"], p["be2"])
    return jnp.transpose(out, (1, 0, 2)), None


if __name__ == "__main__":
    # Small shapes consistent with the module's conventions.
    S, B, H = 8, 2, 32        # seq_len, batch, model_dim (hidden)
    U, R, FF = 32, 4, 64      # hidden_ab_size, attention_heads/fixed_len, ff size

    key = jax.random.PRNGKey(0)
    ks = jax.random.split(key, 12)
    scale = 0.05
    params = {
        "w1":  scale * jax.random.normal(ks[0], (H, U), jnp.float32),
        "b1":  scale * jax.random.normal(ks[1], (1, U), jnp.float32),
        "w2":  scale * jax.random.normal(ks[2], (U, R), jnp.float32),
        "b2":  scale * jax.random.normal(ks[3], (1, R), jnp.float32),
        "g1":  1.0 + 0.01 * jax.random.normal(ks[4], (1, H), jnp.float32),
        "be1": 0.01 * jax.random.normal(ks[5], (1, H), jnp.float32),
        "wf1": scale * jax.random.normal(ks[6], (H, FF), jnp.float32),
        "bf1": scale * jax.random.normal(ks[7], (1, FF), jnp.float32),
        "wf2": scale * jax.random.normal(ks[8], (FF, H), jnp.float32),
        "bf2": scale * jax.random.normal(ks[9], (1, H), jnp.float32),
        "g2":  1.0 + 0.01 * jax.random.normal(ks[10], (1, H), jnp.float32),
        "be2": 0.01 * jax.random.normal(ks[11], (1, H), jnp.float32),
    }

    enc_output = jax.random.normal(jax.random.PRNGKey(42), (S, B, H), jnp.float32)
    # mask: (B, 1, S), True == masked (padding). Second batch item has 3 padded steps.
    lengths = jnp.array([S, S - 3])
    mask = (jnp.arange(S)[None, None, :] >= lengths[:, None, None])   # (B, 1, S) bool

    out, alphas = attention_bridge_forward(enc_output, mask, params)
    out = jax.block_until_ready(out)

    ref_out, _ = _reference_forward(enc_output, mask, params)
    assert out.shape == (R, B, H)
    assert alphas is None
    # bf16 MXU inputs in both kernel and reference -> tight tolerance still holds.
    assert jnp.allclose(out, ref_out, rtol=1e-3, atol=1e-3), "mismatch vs reference"

    print("KERNEL_OK")
</pallas_src>

<mosaic_0001>
module attributes {stable_mosaic.version = 11 : i64} {
  func.func @_bridge_kernel(%arg0: i32, %arg1: memref<2xi32, #tpu.memory_space<smem>>, %arg2: memref<2x8x32xbf16, #tpu.memory_space<vmem>>, %arg3: memref<32x32xbf16, #tpu.memory_space<vmem>>, %arg4: memref<1x32xf32, #tpu.memory_space<vmem>>, %arg5: memref<32x4xbf16, #tpu.memory_space<vmem>>, %arg6: memref<1x4xf32, #tpu.memory_space<vmem>>, %arg7: memref<1x32xf32, #tpu.memory_space<vmem>>, %arg8: memref<1x32xf32, #tpu.memory_space<vmem>>, %arg9: memref<32x64xbf16, #tpu.memory_space<vmem>>, %arg10: memref<1x64xf32, #tpu.memory_space<vmem>>, %arg11: memref<64x32xbf16, #tpu.memory_space<vmem>>, %arg12: memref<1x32xf32, #tpu.memory_space<vmem>>, %arg13: memref<1x32xf32, #tpu.memory_space<vmem>>, %arg14: memref<1x32xf32, #tpu.memory_space<vmem>>, %arg15: memref<8x32xf32, #tpu.memory_space<vmem>>, %arg16: memref<8x32xf32, #tpu.memory_space<vmem>>) attributes {dimension_semantics = [#tpu.dimension_semantics<parallel>], iteration_bounds = array<i64: 1>, scalar_prefetch = 1 : i64, scratch_operands = 1 : i64, tpu.core_type = #tpu.core_type<tc>, window_params = [{transform_indices = @transform_0, window_bounds = array<i64: 2, 8, 32>}, {pipeline_mode = #tpu.pipeline_mode<synchronous>, transform_indices = @transform_1, window_bounds = array<i64: 32, 32>}, {pipeline_mode = #tpu.pipeline_mode<synchronous>, transform_indices = @transform_2, window_bounds = array<i64: 1, 32>}, {pipeline_mode = #tpu.pipeline_mode<synchronous>, transform_indices = @transform_3, window_bounds = array<i64: 32, 4>}, {pipeline_mode = #tpu.pipeline_mode<synchronous>, transform_indices = @transform_4, window_bounds = array<i64: 1, 4>}, {pipeline_mode = #tpu.pipeline_mode<synchronous>, transform_indices = @transform_5, window_bounds = array<i64: 1, 32>}, {pipeline_mode = #tpu.pipeline_mode<synchronous>, transform_indices = @transform_6, window_bounds = array<i64: 1, 32>}, {pipeline_mode = #tpu.pipeline_mode<synchronous>, transform_indices = @transform_7, window_bounds = array<i64: 32, 64>}, {pipeline_mode = #tpu.pipeline_mode<synchronous>, transform_indices = @transform_8, window_bounds = array<i64: 1, 64>}, {pipeline_mode = #tpu.pipeline_mode<synchronous>, transform_indices = @transform_9, window_bounds = array<i64: 64, 32>}, {pipeline_mode = #tpu.pipeline_mode<synchronous>, transform_indices = @transform_10, window_bounds = array<i64: 1, 32>}, {pipeline_mode = #tpu.pipeline_mode<synchronous>, transform_indices = @transform_11, window_bounds = array<i64: 1, 32>}, {pipeline_mode = #tpu.pipeline_mode<synchronous>, transform_indices = @transform_12, window_bounds = array<i64: 1, 32>}, {transform_indices = @transform_13, window_bounds = array<i64: 8, 32>}]} {
    %c0 = arith.constant 0 : index
    %c0_0 = arith.constant 0 : index
    %c0_1 = arith.constant 0 : index
    %0 = vector.load %arg2[%c0, %c0_0, %c0_1] : memref<2x8x32xbf16, #tpu.memory_space<vmem>>, vector<2x8x32xbf16>
    %1 = vector.shape_cast %0 : vector<2x8x32xbf16> to vector<16x32xbf16>
    %c0_2 = arith.constant 0 : index
    %c0_3 = arith.constant 0 : index
    %2 = vector.load %arg3[%c0_2, %c0_3] : memref<32x32xbf16, #tpu.memory_space<vmem>>, vector<32x32xbf16>
    %cst = arith.constant dense<0.000000e+00> : vector<16x32xf32>
    %3 = tpu.matmul %1, %2, %cst {dimension_numbers = #tpu.dot_dimension_numbers<[1], [0], [0], [1], [0, 0, 1, 1], [], []>} : vector<16x32xbf16>, vector<32x32xbf16>, vector<16x32xf32> -> vector<16x32xf32>
    %c0_4 = arith.constant 0 : index
    %c0_5 = arith.constant 0 : index
    %4 = vector.load %arg4[%c0_4, %c0_5] : memref<1x32xf32, #tpu.memory_space<vmem>>, vector<1x32xf32>
    %5 = vector.broadcast %4 : vector<1x32xf32> to vector<16x32xf32>
    %6 = arith.addf %3, %5 : vector<16x32xf32>
    %cst_6 = arith.constant 0.000000e+00 : f32
    %7 = vector.broadcast %cst_6 : f32 to vector<16x32xf32>
    %8 = arith.maximumf %6, %7 : vector<16x32xf32>
    %9 = arith.truncf %8 : vector<16x32xf32> to vector<16x32xbf16>
    %c0_7 = arith.constant 0 : index
    %c0_8 = arith.constant 0 : index
    %10 = vector.load %arg5[%c0_7, %c0_8] : memref<32x4xbf16, #tpu.memory_space<vmem>>, vector<32x4xbf16>
    %cst_9 = arith.constant dense<0.000000e+00> : vector<16x4xf32>
    %11 = tpu.matmul %9, %10, %cst_9 {dimension_numbers = #tpu.dot_dimension_numbers<[1], [0], [0], [1], [0, 0, 1, 1], [], []>} : vector<16x32xbf16>, vector<32x4xbf16>, vector<16x4xf32> -> vector<16x4xf32>
    %c0_10 = arith.constant 0 : index
    %c0_11 = arith.constant 0 : index
    %12 = vector.load %arg6[%c0_10, %c0_11] : memref<1x4xf32, #tpu.memory_space<vmem>>, vector<1x4xf32>
    %13 = vector.broadcast %12 : vector<1x4xf32> to vector<16x4xf32>
    %14 = arith.addf %11, %13 : vector<16x4xf32>
    %15 = tpu.iota {dimensions = array<i32: 0>} : vector<8x1xi32>
    %16 = vector.extract_strided_slice %14 {offsets = [0, 0], sizes = [8, 4], strides = [1, 1]} : vector<16x4xf32> to vector<8x4xf32>
    %c2_i32 = arith.constant 2 : i32
    %17 = arith.muli %arg0, %c2_i32 : i32
    %c0_i32 = arith.constant 0 : i32
    %18 = arith.addi %17, %c0_i32 : i32
    %19 = arith.index_cast %18 : i32 to index
    %20 = memref.load %arg1[%19] : memref<2xi32, #tpu.memory_space<smem>>
    %21 = vector.broadcast %20 : i32 to vector<8x1xi32>
    %22 = arith.cmpi sge, %15, %21 : vector<8x1xi32>
    %cst_12 = arith.constant -1.000000e+04 : f32
    %cst_13 = arith.constant 0.000000e+00 : f32
    %23 = vector.broadcast %cst_12 : f32 to vector<8x1xf32>
    %24 = vector.broadcast %cst_13 : f32 to vector<8x1xf32>
    %25 = arith.select %22, %23, %24 : vector<8x1xi1>, vector<8x1xf32>
    %26 = vector.broadcast %25 : vector<8x1xf32> to vector<8x4xf32>
    %27 = arith.addf %16, %26 : vector<8x4xf32>
    %cst_14 = arith.constant dense<0xFF800000> : vector<4xf32>
    %28 = vector.multi_reduction <maximumf>, %27, %cst_14 [0] : vector<8x4xf32> to vector<4xf32>
    %29 = vector.shape_cast %28 : vector<4xf32> to vector<1x4xf32>
    %30 = vector.broadcast %29 : vector<1x4xf32> to vector<8x4xf32>
    %31 = arith.subf %27, %30 : vector<8x4xf32>
    %32 = math.exp %31 : vector<8x4xf32>
    %cst_15 = arith.constant dense<0.000000e+00> : vector<4xf32>
    %33 = vector.multi_reduction <add>, %32, %cst_15 [0] : vector<8x4xf32> to vector<4xf32>
    %34 = vector.shape_cast %33 : vector<4xf32> to vector<1x4xf32>
    %35 = vector.broadcast %34 : vector<1x4xf32> to vector<8x4xf32>
    %36 = arith.divf %32, %35 : vector<8x4xf32>
    %37 = arith.truncf %36 : vector<8x4xf32> to vector<8x4xbf16>
    %38 = vector.extract_strided_slice %0 {offsets = [0, 0, 0], sizes = [1, 8, 32], strides = [1, 1, 1]} : vector<2x8x32xbf16> to vector<1x8x32xbf16>
    %39 = vector.shape_cast %38 : vector<1x8x32xbf16> to vector<8x32xbf16>
    %cst_16 = arith.constant dense<0.000000e+00> : vector<4x32xf32>
    %40 = tpu.matmul %37, %39, %cst_16 {dimension_numbers = #tpu.dot_dimension_numbers<[0], [0], [1], [1], [0, 1, 1, 1], [], []>} : vector<8x4xbf16>, vector<8x32xbf16>, vector<4x32xf32> -> vector<4x32xf32>
    %c0_17 = arith.constant 0 : index
    %c0_18 = arith.constant 0 : index
    %41 = vector.load %arg16[%c0_17, %c0_18] : memref<8x32xf32, #tpu.memory_space<vmem>>, vector<4x32xf32>
    tpu.vector_store %arg16[%c0_17, %c0_18], %40 {strides = array<i32>} : memref<8x32xf32, #tpu.memory_space<vmem>>, vector<4x32xf32>,
    %42 = vector.extract_strided_slice %14 {offsets = [8, 0], sizes = [8, 4], strides = [1, 1]} : vector<16x4xf32> to vector<8x4xf32>
    %c2_i32_19 = arith.constant 2 : i32
    %43 = arith.muli %arg0, %c2_i32_19 : i32
    %c1_i32 = arith.constant 1 : i32
    %44 = arith.addi %43, %c1_i32 : i32
    %45 = arith.index_cast %44 : i32 to index
    %46 = memref.load %arg1[%45] : memref<2xi32, #tpu.memory_space<smem>>
    %47 = vector.broadcast %46 : i32 to vector<8x1xi32>
    %48 = arith.cmpi sge, %15, %47 : vector<8x1xi32>
    %cst_20 = arith.constant -1.000000e+04 : f32
    %cst_21 = arith.constant 0.000000e+00 : f32
    %49 = vector.broadcast %cst_20 : f32 to vector<8x1xf32>
    %50 = vector.broadcast %cst_21 : f32 to vector<8x1xf32>
    %51 = arith.select %48, %49, %50 : vector<8x1xi1>, vector<8x1xf32>
    %52 = vector.broadcast %51 : vector<8x1xf32> to vector<8x4xf32>
    %53 = arith.addf %42, %52 : vector<8x4xf32>
    %cst_22 = arith.constant dense<0xFF800000> : vector<4xf32>
    %54 = vector.multi_reduction <maximumf>, %53, %cst_22 [0] : vector<8x4xf32> to vector<4xf32>
    %55 = vector.shape_cast %54 : vector<4xf32> to vector<1x4xf32>
    %56 = vector.broadcast %55 : vector<1x4xf32> to vector<8x4xf32>
    %57 = arith.subf %53, %56 : vector<8x4xf32>
    %58 = math.exp %57 : vector<8x4xf32>
    %cst_23 = arith.constant dense<0.000000e+00> : vector<4xf32>
    %59 = vector.multi_reduction <add>, %58, %cst_23 [0] : vector<8x4xf32> to vector<4xf32>
    %60 = vector.shape_cast %59 : vector<4xf32> to vector<1x4xf32>
    %61 = vector.broadcast %60 : vector<1x4xf32> to vector<8x4xf32>
    %62 = arith.divf %58, %61 : vector<8x4xf32>
    %63 = arith.truncf %62 : vector<8x4xf32> to vector<8x4xbf16>
    %64 = vector.extract_strided_slice %0 {offsets = [1, 0, 0], sizes = [1, 8, 32], strides = [1, 1, 1]} : vector<2x8x32xbf16> to vector<1x8x32xbf16>
    %65 = vector.shape_cast %64 : vector<1x8x32xbf16> to vector<8x32xbf16>
    %cst_24 = arith.constant dense<0.000000e+00> : vector<4x32xf32>
    %66 = tpu.matmul %63, %65, %cst_24 {dimension_numbers = #tpu.dot_dimension_numbers<[0], [0], [1], [1], [0, 1, 1, 1], [], []>} : vector<8x4xbf16>, vector<8x32xbf16>, vector<4x32xf32> -> vector<4x32xf32>
    %c4 = arith.constant 4 : index
    %c0_25 = arith.constant 0 : index
    %67 = vector.load %arg16[%c4, %c0_25] : memref<8x32xf32, #tpu.memory_space<vmem>>, vector<4x32xf32>
    tpu.vector_store %arg16[%c4, %c0_25], %66 {strides = array<i32>} : memref<8x32xf32, #tpu.memory_space<vmem>>, vector<4x32xf32>,
    %c0_26 = arith.constant 0 : index
    %c0_27 = arith.constant 0 : index
    %68 = vector.load %arg16[%c0_26, %c0_27] : memref<8x32xf32, #tpu.memory_space<vmem>>, vector<8x32xf32>
    %c0_28 = arith.constant 0 : index
    %c0_29 = arith.constant 0 : index
    %69 = vector.load %arg7[%c0_28, %c0_29] : memref<1x32xf32, #tpu.memory_space<vmem>>, vector<1x32xf32>
    %c0_30 = arith.constant 0 : index
    %c0_31 = arith.constant 0 : index
    %70 = vector.load %arg8[%c0_30, %c0_31] : memref<1x32xf32, #tpu.memory_space<vmem>>, vector<1x32xf32>
    %cst_32 = arith.constant dense<0.000000e+00> : vector<8xf32>
    %71 = vector.multi_reduction <add>, %68, %cst_32 [1] : vector<8x32xf32> to vector<8xf32>
    %72 = vector.shape_cast %71 : vector<8xf32> to vector<8x1xf32>
    %cst_33 = arith.constant 3.200000e+01 : f32
    %73 = vector.broadcast %cst_33 : f32 to vector<8x1xf32>
    %74 = arith.divf %72, %73 : vector<8x1xf32>
    %75 = vector.broadcast %74 : vector<8x1xf32> to vector<8x32xf32>
    %76 = arith.subf %68, %75 : vector<8x32xf32>
    %77 = arith.mulf %76, %76 : vector<8x32xf32>
    %cst_34 = arith.constant dense<0.000000e+00> : vector<8xf32>
    %78 = vector.multi_reduction <add>, %77, %cst_34 [1] : vector<8x32xf32> to vector<8xf32>
    %79 = vector.shape_cast %78 : vector<8xf32> to vector<8x1xf32>
    %cst_35 = arith.constant 3.200000e+01 : f32
    %80 = vector.broadcast %cst_35 : f32 to vector<8x1xf32>
    %81 = arith.divf %79, %80 : vector<8x1xf32>
    %82 = vector.broadcast %74 : vector<8x1xf32> to vector<8x32xf32>
    %83 = arith.subf %68, %82 : vector<8x32xf32>
    %cst_36 = arith.constant 9.99999997E-7 : f32
    %84 = vector.broadcast %cst_36 : f32 to vector<8x1xf32>
    %85 = arith.addf %81, %84 : vector<8x1xf32>
    %86 = math.rsqrt %85 : vector<8x1xf32>
    %87 = vector.broadcast %86 : vector<8x1xf32> to vector<8x32xf32>
    %88 = arith.mulf %83, %87 : vector<8x32xf32>
    %89 = vector.broadcast %69 : vector<1x32xf32> to vector<8x32xf32>
    %90 = arith.mulf %88, %89 : vector<8x32xf32>
    %91 = vector.broadcast %70 : vector<1x32xf32> to vector<8x32xf32>
    %92 = arith.addf %90, %91 : vector<8x32xf32>
    %93 = arith.truncf %92 : vector<8x32xf32> to vector<8x32xbf16>
    %c0_37 = arith.constant 0 : index
    %c0_38 = arith.constant 0 : index
    %94 = vector.load %arg9[%c0_37, %c0_38] : memref<32x64xbf16, #tpu.memory_space<vmem>>, vector<32x64xbf16>
    %cst_39 = arith.constant dense<0.000000e+00> : vector<8x64xf32>
    %95 = tpu.matmul %93, %94, %cst_39 {dimension_numbers = #tpu.dot_dimension_numbers<[1], [0], [0], [1], [0, 0, 1, 1], [], []>} : vector<8x32xbf16>, vector<32x64xbf16>, vector<8x64xf32> -> vector<8x64xf32>
    %c0_40 = arith.constant 0 : index
    %c0_41 = arith.constant 0 : index
    %96 = vector.load %arg10[%c0_40, %c0_41] : memref<1x64xf32, #tpu.memory_space<vmem>>, vector<1x64xf32>
    %97 = vector.broadcast %96 : vector<1x64xf32> to vector<8x64xf32>
    %98 = arith.addf %95, %97 : vector<8x64xf32>
    %cst_42 = arith.constant 0.000000e+00 : f32
    %99 = vector.broadcast %cst_42 : f32 to vector<8x64xf32>
    %100 = arith.maximumf %98, %99 : vector<8x64xf32>
    %101 = arith.truncf %100 : vector<8x64xf32> to vector<8x64xbf16>
    %c0_43 = arith.constant 0 : index
    %c0_44 = arith.constant 0 : index
    %102 = vector.load %arg11[%c0_43, %c0_44] : memref<64x32xbf16, #tpu.memory_space<vmem>>, vector<64x32xbf16>
    %cst_45 = arith.constant dense<0.000000e+00> : vector<8x32xf32>
    %103 = tpu.matmul %101, %102, %cst_45 {dimension_numbers = #tpu.dot_dimension_numbers<[1], [0], [0], [1], [0, 0, 1, 1], [], []>} : vector<8x64xbf16>, vector<64x32xbf16>, vector<8x32xf32> -> vector<8x32xf32>
    %c0_46 = arith.constant 0 : index
    %c0_47 = arith.constant 0 : index
    %104 = vector.load %arg12[%c0_46, %c0_47] : memref<1x32xf32, #tpu.memory_space<vmem>>, vector<1x32xf32>
    %105 = vector.broadcast %104 : vector<1x32xf32> to vector<8x32xf32>
    %106 = arith.addf %103, %105 : vector<8x32xf32>
    %c0_48 = arith.constant 0 : index
    %c0_49 = arith.constant 0 : index
    %107 = vector.load %arg13[%c0_48, %c0_49] : memref<1x32xf32, #tpu.memory_space<vmem>>, vector<1x32xf32>
    %c0_50 = arith.constant 0 : index
    %c0_51 = arith.constant 0 : index
    %108 = vector.load %arg14[%c0_50, %c0_51] : memref<1x32xf32, #tpu.memory_space<vmem>>, vector<1x32xf32>
    %cst_52 = arith.constant dense<0.000000e+00> : vector<8xf32>
    %109 = vector.multi_reduction <add>, %106, %cst_52 [1] : vector<8x32xf32> to vector<8xf32>
    %110 = vector.shape_cast %109 : vector<8xf32> to vector<8x1xf32>
    %cst_53 = arith.constant 3.200000e+01 : f32
    %111 = vector.broadcast %cst_53 : f32 to vector<8x1xf32>
    %112 = arith.divf %110, %111 : vector<8x1xf32>
    %113 = vector.broadcast %112 : vector<8x1xf32> to vector<8x32xf32>
    %114 = arith.subf %106, %113 : vector<8x32xf32>
    %115 = arith.mulf %114, %114 : vector<8x32xf32>
    %cst_54 = arith.constant dense<0.000000e+00> : vector<8xf32>
    %116 = vector.multi_reduction <add>, %115, %cst_54 [1] : vector<8x32xf32> to vector<8xf32>
    %117 = vector.shape_cast %116 : vector<8xf32> to vector<8x1xf32>
    %cst_55 = arith.constant 3.200000e+01 : f32
    %118 = vector.broadcast %cst_55 : f32 to vector<8x1xf32>
    %119 = arith.divf %117, %118 : vector<8x1xf32>
    %120 = vector.broadcast %112 : vector<8x1xf32> to vector<8x32xf32>
    %121 = arith.subf %106, %120 : vector<8x32xf32>
    %cst_56 = arith.constant 9.99999997E-7 : f32
    %122 = vector.broadcast %cst_56 : f32 to vector<8x1xf32>
    %123 = arith.addf %119, %122 : vector<8x1xf32>
    %124 = math.rsqrt %123 : vector<8x1xf32>
    %125 = vector.broadcast %124 : vector<8x1xf32> to vector<8x32xf32>
    %126 = arith.mulf %121, %125 : vector<8x32xf32>
    %127 = vector.broadcast %107 : vector<1x32xf32> to vector<8x32xf32>
    %128 = arith.mulf %126, %127 : vector<8x32xf32>
    %129 = vector.broadcast %108 : vector<1x32xf32> to vector<8x32xf32>
    %130 = arith.addf %128, %129 : vector<8x32xf32>
    %c0_57 = arith.constant 0 : index
    %c0_58 = arith.constant 0 : index
    %131 = vector.load %arg15[%c0_57, %c0_58] : memref<8x32xf32, #tpu.memory_space<vmem>>, vector<8x32xf32>
    tpu.vector_store %arg15[%c0_57, %c0_58], %130 {strides = array<i32>} : memref<8x32xf32, #tpu.memory_space<vmem>>, vector<8x32xf32>,
    return
  }
  func.func @transform_0(%arg0: i32, %arg1: memref<2xi32, #tpu.memory_space<smem>>) -> (i32, i32, i32) {
    %c0_i32 = arith.constant 0 : i32
    %c0_i32_0 = arith.constant 0 : i32
    %c0_i32_1 = arith.constant 0 : i32
    return %arg0, %c0_i32, %c0_i32_0 : i32, i32, i32
  }
  func.func @transform_1(%arg0: i32, %arg1: memref<2xi32, #tpu.memory_space<smem>>) -> (i32, i32) {
    %c0_i32 = arith.constant 0 : i32
    %c0_i32_0 = arith.constant 0 : i32
    %c0_i32_1 = arith.constant 0 : i32
    return %c0_i32, %c0_i32_0 : i32, i32
  }
  func.func @transform_2(%arg0: i32, %arg1: memref<2xi32, #tpu.memory_space<smem>>) -> (i32, i32) {
    %c0_i32 = arith.constant 0 : i32
    %c0_i32_0 = arith.constant 0 : i32
    %c0_i32_1 = arith.constant 0 : i32
    return %c0_i32, %c0_i32_0 : i32, i32
  }
  func.func @transform_3(%arg0: i32, %arg1: memref<2xi32, #tpu.memory_space<smem>>) -> (i32, i32) {
    %c0_i32 = arith.constant 0 : i32
    %c0_i32_0 = arith.constant 0 : i32
    %c0_i32_1 = arith.constant 0 : i32
    return %c0_i32, %c0_i32_0 : i32, i32
  }
  func.func @transform_4(%arg0: i32, %arg1: memref<2xi32, #tpu.memory_space<smem>>) -> (i32, i32) {
    %c0_i32 = arith.constant 0 : i32
    %c0_i32_0 = arith.constant 0 : i32
    %c0_i32_1 = arith.constant 0 : i32
    return %c0_i32, %c0_i32_0 : i32, i32
  }
  func.func @transform_5(%arg0: i32, %arg1: memref<2xi32, #tpu.memory_space<smem>>) -> (i32, i32) {
    %c0_i32 = arith.constant 0 : i32
    %c0_i32_0 = arith.constant 0 : i32
    %c0_i32_1 = arith.constant 0 : i32
    return %c0_i32, %c0_i32_0 : i32, i32
  }
  func.func @transform_6(%arg0: i32, %arg1: memref<2xi32, #tpu.memory_space<smem>>) -> (i32, i32) {
    %c0_i32 = arith.constant 0 : i32
    %c0_i32_0 = arith.constant 0 : i32
    %c0_i32_1 = arith.constant 0 : i32
    return %c0_i32, %c0_i32_0 : i32, i32
  }
  func.func @transform_7(%arg0: i32, %arg1: memref<2xi32, #tpu.memory_space<smem>>) -> (i32, i32) {
    %c0_i32 = arith.constant 0 : i32
    %c0_i32_0 = arith.constant 0 : i32
    %c0_i32_1 = arith.constant 0 : i32
    return %c0_i32, %c0_i32_0 : i32, i32
  }
  func.func @transform_8(%arg0: i32, %arg1: memref<2xi32, #tpu.memory_space<smem>>) -> (i32, i32) {
    %c0_i32 = arith.constant 0 : i32
    %c0_i32_0 = arith.constant 0 : i32
    %c0_i32_1 = arith.constant 0 : i32
    return %c0_i32, %c0_i32_0 : i32, i32
  }
  func.func @transform_9(%arg0: i32, %arg1: memref<2xi32, #tpu.memory_space<smem>>) -> (i32, i32) {
    %c0_i32 = arith.constant 0 : i32
    %c0_i32_0 = arith.constant 0 : i32
    %c0_i32_1 = arith.constant 0 : i32
    return %c0_i32, %c0_i32_0 : i32, i32
  }
  func.func @transform_10(%arg0: i32, %arg1: memref<2xi32, #tpu.memory_space<smem>>) -> (i32, i32) {
    %c0_i32 = arith.constant 0 : i32
    %c0_i32_0 = arith.constant 0 : i32
    %c0_i32_1 = arith.constant 0 : i32
    return %c0_i32, %c0_i32_0 : i32, i32
  }
  func.func @transform_11(%arg0: i32, %arg1: memref<2xi32, #tpu.memory_space<smem>>) -> (i32, i32) {
    %c0_i32 = arith.constant 0 : i32
    %c0_i32_0 = arith.constant 0 : i32
    %c0_i32_1 = arith.constant 0 : i32
    return %c0_i32, %c0_i32_0 : i32, i32
  }
  func.func @transform_12(%arg0: i32, %arg1: memref<2xi32, #tpu.memory_space<smem>>) -> (i32, i32) {
    %c0_i32 = arith.constant 0 : i32
    %c0_i32_0 = arith.constant 0 : i32
    %c0_i32_1 = arith.constant 0 : i32
    return %c0_i32, %c0_i32_0 : i32, i32
  }
  func.func @transform_13(%arg0: i32, %arg1: memref<2xi32, #tpu.memory_space<smem>>) -> (i32, i32) {
    %c0_i32 = arith.constant 0 : i32
    %c0_i32_0 = arith.constant 0 : i32
    return %arg0, %c0_i32 : i32, i32
  }
}

</mosaic_0001>

<bundles_post_ra>
// kernel: tpu_custom_call.1
= control target key start
LH: loop header
LB: loop body
LE: loop exit
PB: predicated region body
PF: predicated region fallthrough
CT: control target
= control target key end

     0   :  { %s959_s0 = inlined_call_operand.vmem [shape: s32[2], index: 0, kind: input, shape index: {}]   ;;  %s960_s1 = inlined_call_operand.vmem [shape: bf16[2,8,32], index: 1, kind: input, shape index: {}]   ;;  %s961_s2 = inlined_call_operand.vmem [shape: bf16[32,32], index: 2, kind: input, shape index: {}]   ;;  %s962_s3 = inlined_call_operand.vmem [shape: f32[1,32], index: 3, kind: input, shape index: {}]   ;;  %s963_s4 = inlined_call_operand.vmem [shape: bf16[32,4], index: 4, kind: input, shape index: {}]   ;;  %s964_s5 = inlined_call_operand.vmem [shape: f32[1,4], index: 5, kind: input, shape index: {}]   ;;  %s965_s6 = inlined_call_operand.vmem [shape: f32[1,32], index: 6, kind: input, shape index: {}]   ;;  %s966_s7 = inlined_call_operand.vmem [shape: f32[1,32], index: 7, kind: input, shape index: {}]   ;;  %s967_s8 = inlined_call_operand.vmem [shape: bf16[32,64], index: 8, kind: input, shape index: {}]   ;;  %s968_s9 = inlined_call_operand.vmem [shape: f32[1,64], index: 9, kind: input, shape index: {}]   ;;  %s969_s10 = inlined_call_operand.vmem [shape: bf16[64,32], index: 10, kind: input, shape index: {}]   ;;  %s970_s11 = inlined_call_operand.vmem [shape: f32[1,32], index: 11, kind: input, shape index: {}]   ;;  %s971_s12 = inlined_call_operand.vmem [shape: f32[1,32], index: 12, kind: input, shape index: {}]   ;;  %s972_s13 = inlined_call_operand.vmem [shape: f32[1,32], index: 13, kind: input, shape index: {}]   ;;  %s973_s14 = inlined_call_operand.hbm [shape: f32[8,32], index: 14, kind: output, shape index: {}]  }
   0x1   :  { %s19_s15 = sshll.u32 %s959_s0, 4  ;;  %s20_s15 = int_to_ptr.vmem [resolvable:$true] %s19_s15 }
   0x2   :  { %s729_s16 = scalar_lea.vmem %s20_s15, 16  ;;  %p734_p1 = scmp.lt.s32.totalorder %s20_s15, %s20_s15 }
   0x3   :  { %p730_p0 = scmp.ne.s32.totalorder %s20_s15, %s729_s16  ;;  %p735_p2 = scmp.lt.s32.totalorder %s729_s16, %s729_s16 }
   0x5   :  { %p736_p3 = por %p735_p2, %p734_p1 }
   0x7   :  { %p737_p4 = pnand %p736_p3, %p730_p0 }
   0x9   :  { %740 = shalt.err (!%p737_p4)  }
   0xa   :  { %s767_s17 = smov [#allocation4]  }
   0xb   :  { %22 = dma.vmem_to_smem %s20_s15, 16, %s767_s17, [#allocation3] }
   0xc   :  { %763 = dma.done.wait [#allocation3], 16 }
   0xd   :  { %764 = vsyncadd [#allocation3], 4294967280 }
   0xe   :  { %24 = sfence }
   0xf   :  { %v706_v0 = vld [vmem:[%s961_s2] sm:$0xff]   ;;  %v768_v1 = vmov 0.0   ;;  %v707_v2 = vld [vmem:[%s961_s2 + $0x8] sm:$0xff]   ;;  %vm769_vm0 = vmmov 0   ;;  %vm83_vm1 = vcmask 261120  }
  0x10   :  { %653 = vmatprep.subr.bf16.mxu0 %v768_v1  ;;  %661 = vmatprep.subr.bf16.mxu1 %v768_v1  ;;  %v53_v3 = vld [vmem:[%s960_s1] sm:$0xf]  ;;  %v54_v4 = vld [vmem:[%s960_s1 + $0x4] sm:$0xf] }
  0x11   :  { %654 = vmatpush3.bf16.msra.mxu0 %v706_v0  ;;  %657 = vmatprep.mubr.msk.bf16.mxu0 %vm769_vm0, %v768_v1  ;;  %v610_v5 = vcombine.low %v53_v3, %v54_v4 }
  0x12   :  { %655 = vmatprep.subr.bf16.mxu0 %v768_v1  ;;  %665 = vmatprep.mubr.msk.bf16.mxu1 %vm769_vm0, %v768_v1 }
  0x15   :  { %656 = vmatpush3.bf16.msra.mxu0 %v707_v2 }
  0x16   :  { %669 = vmatprep.subr.bf16.mxu0 %v768_v1 }
  0x17   :  { %25 = vsyncpa [#allocation6], 0  ;;  %v709_v6 = vld [vmem:[%s963_s4] sm:$0xff]   ;;  %v710_v7 = vld [vmem:[%s963_s4 + $0x8] sm:$0xff]   ;;  %vm247_vm2 = vcmask 1043456   ;;  %s619_s4 = sld [smem:[#allocation4 + $0x1]]  ;;  %v198_v20 = vlaneseq }
  0x18   :  { %658 = vmatmul.mubr.msk.bf16.vlgmr.msra.gmra.mrb[0].mxu0 %vm83_vm1, %v610_v5  ;;  %662 = vmatpush3.bf16.msra.mxu1 %v709_v6  ;;  %v609_v8 = vld [vmem:[%s962_s3] ss:$0 sm:$0xff]  ;;  %v249_v18 = vsel %vm247_vm2, %v53_v3, 0  ;;  %v339_v19 = vsel %vm247_vm2, %v54_v4, 0  ;;  %s201_s3 = sld [smem:[#allocation4]]  ;;  %vm206_vm5 = vcmask 31744  }
  0x19   :  { %671 = vmatprep.mubr.msk.bf16.mxu0 %vm769_vm0, %v768_v1  ;;  %663 = vmatprep.subr.bf16.mxu1 %v768_v1  ;;  %v199_v21 = vshrl.u32 %v198_v20, 7  ;;  %v614_v24 = vld [vmem:[%s964_s5] ss:$0 sm:$0xff]  ;;  %vm243_vm6 = vcmask 64512   ;;  %vm291_vm7 = vcmask 257024   ;;  %vm521_vm8 = vcmask 523264  }
  0x1a   :  { %670 = vmatpush3.bf16.msra.mxu0 %v249_v18 }
  0x1b   :  { %681 = vmatprep.subr.bf16.mxu0 %v768_v1 }
  0x1c   :  { %664 = vmatpush3.bf16.msra.mxu1 %v710_v7 }
  0x1d   :  { %675 = vmatprep.subr.bf16.mxu1 %v768_v1  ;;  %v295_v23 = vstv %s619_s4 }
  0x1e   :  { %v202_v22 = vstv %s201_s3  ;;  %vm296_vm4 = vcmp.ge.s32.totalorder %v199_v21, %v295_v23  ;;  %s770_s3 = smov [#allocation5]  }
  0x1f   :  { %vm203_vm3 = vcmp.ge.s32.totalorder %v199_v21, %v202_v22  ;;  %v297_v30 = vsel %vm296_vm4, -10000.0, %v768_v1  ;;  %s601_s4 = sshll.u32 %s770_s3, 4  ;;  %s602_s4 = int_to_ptr.vmem [resolvable:$true] %s601_s4 }
  0x20   :  { %v204_v26 = vsel %vm203_vm3, -10000.0, %v768_v1  ;;  %s741_s29 = scalar_lea.vmem %s602_s4, 128  ;;  %p746_p6 = scmp.lt.s32.totalorder %s602_s4, %s602_s4 }
  0x21   :  { %p742_p5 = scmp.ne.s32.totalorder %s602_s4, %s741_s29  ;;  %p747_p7 = scmp.lt.s32.totalorder %s741_s29, %s741_s29 }
  0x23   :  { %p748_p8 = por %p747_p7, %p746_p6 }
  0x25   :  { %p749_p9 = pnand %p748_p8, %p742_p5 }
  0xeb   :  { %v121_v9 = vpop.f32.mrb[0].mxu0 }
  0xec   :  { %v122_v10 = vadd.f32 %v609_v8, %v121_v9  ;;  %v659_v11 = vpop.f32.mrb[1].mxu0 }
  0xed   :  { %v124_v12 = vpop.f32.mrb[2].mxu0 }
  0xee   :  { %v125_v13 = vadd.f32 %v609_v8, %v124_v12  ;;  %v660_v14 = vpop.f32.mrb[3].mxu0  ;;  %v128_v15 = vmax.f32 %v122_v10, 0.0 }
  0xf0   :  { %v129_v16 = vmax.f32 %v125_v13, 0.0 }
  0xf2   :  { %v130_v17 = vpack.c.bf16 %v129_v16, %v128_v15 }
  0xf4   :  { %666 = vmatmul.mubr.msk.bf16.vlgmr.msra.gmra.mrb[0].mxu1 %vm83_vm1, %v130_v17 }
  0xf5   :  { %677 = vmatprep.mubr.msk.bf16.mxu1 %vm769_vm0, %v768_v1  ;;  %676 = vmatpush3.bf16.msra.mxu1 %v339_v19 }
  0xf6   :  { %689 = vmatprep.subr.bf16.mxu1 %v768_v1 }
 0x1c7   :  { %v191_v25 = vpop.f32.mrb[0].mxu1 }
 0x1c8   :  { %v192_v27 = vadd.f32 %v614_v24, %v191_v25  ;;  %v667_v28 = vpop.f32.mrb[1].mxu1 }
 0x1c9   :  { %v194_v29 = vpop.f32.mrb[2].mxu1 }
 0x1ca   :  { %v205_v31 = vadd.f32 %v204_v26, %v192_v27  ;;  %v195_v32 = vadd.f32 %v614_v24, %v194_v29  ;;  %v668_v33 = vpop.f32.mrb[3].mxu1  ;;  %v711_v29 = vld [vmem:[%s967_s8] sm:$0xff]  }
 0x1cc   :  { %v207_v34 = vsel %vm206_vm5, %v205_v31, -inf  ;;  %v298_v35 = vadd.f32 %v297_v30, %v195_v32  ;;  %v712_v30 = vld [vmem:[%s967_s8 + $0x8] sm:$0xff]  }
 0x1cd   :  { %v208_v36 = vrot.slane %v207_v34, 4  ;;  %v714_v32 = vld [vmem:[%s969_s10 + $0x8] sm:$0xff]  }
 0x1ce   :  { %v299_v37 = vsel %vm206_vm5, %v298_v35, -inf }
 0x1cf   :  { %v209_v38 = vmax.f32 %v207_v34, %v208_v36  ;;  %v300_v39 = vrot.slane %v299_v37, 4 }
 0x1d1   :  { %v210_v40 = vrot.slane %v209_v38, 2  ;;  %v301_v41 = vmax.f32 %v299_v37, %v300_v39  ;;  %v621_v37 = vld [vmem:[%s965_s6] ss:$0 sm:$0xff] }
 0x1d2   :  { %v622_v39 = vld [vmem:[%s966_s7] ss:$0 sm:$0xff] }
 0x1d3   :  { %v211_v42 = vmax.f32 %v209_v38, %v210_v40  ;;  %v302_v43 = vrot.slane %v301_v41, 2 }
 0x1d5   :  { %v212_v44 = vrot.slane %v211_v42, 1  ;;  %v303_v45 = vmax.f32 %v301_v41, %v302_v43  ;;  %v715_v43 = vld [vmem:[%s969_s10 + $0x10] sm:$0xff]  }
 0x1d7   :  { %v213_v46 = vmax.f32 %v211_v42, %v212_v44  ;;  %v304_v47 = vrot.slane %v303_v45, 1  ;;  %v716_v44 = vld [vmem:[%s969_s10 + $0x18] sm:$0xff]  }
 0x1d9   :  { %v214_v48 = vsub.f32 %v205_v31, %v213_v46  ;;  %v305_v49 = vmax.f32 %v303_v45, %v304_v47  ;;  %v713_v31 = vld [vmem:[%s969_s10] sm:$0xff]  }
 0x1da   :  { %v623_v45 = vld [vmem:[%s968_s9] ss:$0 sm:$0xff] }
 0x1db   :  { %v215_v50 = vmul.f32 1.442695, %v214_v48  ;;  %v306_v51 = vsub.f32 %v298_v35, %v305_v49 }
 0x1dd   :  { %717 = vpow2.f32 %v215_v50  ;;  %v307_v52 = vmul.f32 1.442695, %v306_v51 }
 0x1df   :  { %719 = vpow2.f32 %v307_v52 }
 0x1e7   :  { %v718_v53 = vpop.eup %717 }
 0x1e8   :  { %v217_v54 = vsel %vm206_vm5, %v718_v53, 0.0 }
 0x1e9   :  { %v720_v55 = vpop.eup %719  ;;  %v218_v56 = vrot.slane %v217_v54, 4 }
 0x1ea   :  { %v309_v57 = vsel %vm206_vm5, %v720_v55, 0.0 }
 0x1eb   :  { %v219_v58 = vadd.f32 %v218_v56, %v217_v54  ;;  %v310_v59 = vrot.slane %v309_v57, 4 }
 0x1ed   :  { %v220_v60 = vrot.slane %v219_v58, 2  ;;  %v311_v61 = vadd.f32 %v310_v59, %v309_v57 }
 0x1ef   :  { %v221_v62 = vadd.f32 %v220_v60, %v219_v58  ;;  %v312_v63 = vrot.slane %v311_v61, 2 }
 0x1f1   :  { %v222_v0 = vrot.slane %v221_v62, 1  ;;  %v313_v2 = vadd.f32 %v312_v63, %v311_v61 }
 0x1f3   :  { %v223_v3 = vadd.f32 %v222_v0, %v221_v62  ;;  %v314_v4 = vrot.slane %v313_v2, 1 }
 0x1f5   :  { %721 = vrcp.f32 %v223_v3  ;;  %v315_v5 = vadd.f32 %v314_v4, %v313_v2 }
 0x1f7   :  { %723 = vrcp.f32 %v315_v5  ;;  %v633_v5 = vld [vmem:[%s971_s12] ss:$0 sm:$0xff] }
 0x1ff   :  { %v722_v6 = vpop.eup %721 }
 0x200   :  { %v225_v7 = vmul.f32 %v722_v6, %v718_v53 }
 0x201   :  { %v724_v8 = vpop.eup %723 }
 0x202   :  { %v226_v9 = vpack.c.bf16 %v225_v7, %v225_v7  ;;  %v317_v10 = vmul.f32 %v724_v8, %v720_v55  ;;  %v634_v7 = vld [vmem:[%s972_s13] ss:$0 sm:$0xff] }
 0x204   :  { %227 = vxpose.xlu0.c.b16.start.end [1/1] (short) (narrow) %v226_v9, 16  ;;  %v318_v11 = vpack.c.bf16 %v317_v10, %v317_v10 }
 0x208   :  { %319 = vxpose.xlu0.c.b16.start.end [1/1] (short) (narrow) %v318_v11, 16 }
 0x26a   :  { %v235_v12 = vpop.trf.xlu0 }
 0x26b   :  { %672 = vmatmul.mubr.msk.bf16.vlgmr.msra.gmra.mrb[4].mxu0 %vm243_vm6, %v235_v12 }
 0x26c   :  { %685 = vmatprep.mubr.msk.bf16.mxu0 %vm769_vm0, %v768_v1  ;;  %682 = vmatpush3.bf16.msra.mxu0 %v711_v29 }
 0x26d   :  { %683 = vmatprep.subr.bf16.mxu0 %v768_v1 }
 0x26e   :  { %v327_v13 = vpop.trf.xlu0 }
 0x26f   :  { %678 = vmatmul.mubr.msk.bf16.vlgmr.msra.gmra.mrb[4].mxu1 %vm243_vm6, %v327_v13 }
 0x270   :  { %697 = vmatprep.mubr.msk.bf16.mxu1 %vm769_vm0, %v768_v1  ;;  %684 = vmatpush3.bf16.msra.mxu0 %v712_v30 }
 0x271   :  { %690 = vmatpush3.bf16.msra.mxu1 %v713_v31 }
 0x272   :  { %691 = vmatprep.subr.bf16.mxu1 %v768_v1 }
 0x275   :  { %692 = vmatpush3.bf16.msra.mxu1 %v714_v32 }
 0x276   :  { %693 = vmatprep.subr.bf16.mxu1 %v768_v1 }
 0x279   :  { %694 = vmatpush3.bf16.msra.mxu1 %v715_v43 }
 0x27a   :  { %695 = vmatprep.subr.bf16.mxu1 %v768_v1  ;;  %v627_v1 = vld [vmem:[%s970_s11] ss:$0 sm:$0xff] }
 0x27d   :  { %696 = vmatpush3.bf16.msra.mxu1 %v716_v44 }
 0x33e   :  { %v285_v14 = vpop.f32.mrb[4].mxu0 }
 0x33f   :  { %292 = vst.msk [vmem:[#allocation2] sm:$0xf] %vm291_vm7, %v285_v14  ;;  %v673_v15 = vpop.f32.mrb[5].mxu0 }
 0x340   :  { %v288_v16 = vpop.f32.mrb[6].mxu0 }
 0x341   :  { %v674_v17 = vpop.f32.mrb[7].mxu0 }
 0x342   :  { %v375_v18 = vpop.f32.mrb[4].mxu1 }
 0x343   :  { %381 = vst.msk [vmem:[#allocation2 + $0x4] sm:$0xf] %vm291_vm7, %v375_v18  ;;  %v679_v19 = vpop.f32.mrb[5].mxu1 }
 0x344   :  { %v378_v20 = vpop.f32.mrb[6].mxu1 }
 0x345   :  { %v680_v21 = vpop.f32.mrb[7].mxu1 }
 0x34a   :  { %v382_v22 = vld [vmem:[#allocation2] sm:$0xff] }
 0x34b   :  { %v385_v23 = vsel %vm83_vm1, %v382_v22, 0.0 }
 0x34c   :  { %386 = vadd.xlane.f32.xlu1 %v385_v23 }
 0x3d9   :  { %v387_v24 = vpop.xlane.xlu1 %386 }
 0x3da   :  { %v389_v25 = vmul.f32 0.03125, %v387_v24 }
 0x3dc   :  { %v390_v26 = vsub.f32 %v382_v22, %v389_v25 }
 0x3de   :  { %v391_v27 = vmul.f32 %v390_v26, %v390_v26 }
 0x3e0   :  { %v392_v28 = vsel %vm83_vm1, %v391_v27, 0.0 }
 0x3e1   :  { %393 = vadd.xlane.f32.xlu1 %v392_v28 }
 0x46e   :  { %v394_v33 = vpop.xlane.xlu1 %393 }
 0x46f   :  { %v395_v34 = vmul.f32 0.03125, %v394_v33 }
 0x471   :  { %v396_v35 = vadd.f32 1e-06, %v395_v34 }
 0x473   :  { %725 = vrsqrt.f32 %v396_v35 }
 0x47d   :  { %v726_v36 = vpop.eup %725 }
 0x47e   :  { %v398_v38 = vmul.f32 %v726_v36, %v390_v26 }
 0x480   :  { %v405_v40 = vmul.f32 %v621_v37, %v398_v38 }
 0x482   :  { %v412_v41 = vadd.f32 %v622_v39, %v405_v40 }
 0x484   :  { %v413_v42 = vpack.c.bf16 %v412_v41, %v412_v41 }
 0x486   :  { %686 = vmatmul.mubr.msk.bf16.vlgmr.msra.gmra.mrb[8].mxu0 %vm83_vm1, %v413_v42 }
 0x559   :  { %v474_v46 = vpop.f32.mrb[8].mxu0 }
 0x55a   :  { %v475_v47 = vadd.f32 %v623_v45, %v474_v46  ;;  %v687_v48 = vpop.f32.mrb[9].mxu0 }
 0x55b   :  { %v477_v49 = vpop.f32.mrb[10].mxu0 }
 0x55c   :  { %v480_v50 = vmax.f32 %v475_v47, 0.0  ;;  %v688_v51 = vpop.f32.mrb[11].mxu0 }
 0x55e   :  { %v481_v52 = vpack.c.bf16 %v480_v50, %v480_v50 }
 0x560   :  { %698 = vmatmul.mubr.msk.bf16.vlgmr.msra.gmra.mrb[8].mxu1 %vm521_vm8, %v481_v52 }
 0x633   :  { %v559_v53 = vpop.f32.mrb[8].mxu1 }
 0x634   :  { %v560_v54 = vadd.f32 %v627_v1, %v559_v53  ;;  %v699_v55 = vpop.f32.mrb[9].mxu1 }
 0x635   :  { %v562_v56 = vpop.f32.mrb[10].mxu1 }
 0x636   :  { %v700_v57 = vpop.f32.mrb[11].mxu1  ;;  %v567_v58 = vsel %vm83_vm1, %v560_v54, 0.0 }
 0x637   :  { %568 = vadd.xlane.f32.xlu0 %v567_v58 }
 0x6c4   :  { %v569_v59 = vpop.xlane.xlu0 %568 }
 0x6c5   :  { %v570_v60 = vmul.f32 0.03125, %v569_v59 }
 0x6c7   :  { %v571_v61 = vsub.f32 %v560_v54, %v570_v60 }
 0x6c9   :  { %v572_v62 = vmul.f32 %v571_v61, %v571_v61 }
 0x6cb   :  { %v573_v63 = vsel %vm83_vm1, %v572_v62, 0.0 }
 0x6cc   :  { %574 = vadd.xlane.f32.xlu1 %v573_v63 }
 0x759   :  { %v575_v0 = vpop.xlane.xlu1 %574 }
 0x75a   :  { %v576_v2 = vmul.f32 0.03125, %v575_v0 }
 0x75c   :  { %v577_v3 = vadd.f32 1e-06, %v576_v2 }
 0x75e   :  { %727 = vrsqrt.f32 %v577_v3 }
 0x768   :  { %v728_v4 = vpop.eup %727 }
 0x769   :  { %v579_v6 = vmul.f32 %v728_v4, %v571_v61 }
 0x76b   :  { %v586_v8 = vmul.f32 %v633_v5, %v579_v6 }
 0x76d   :  { %v593_v9 = vadd.f32 %v634_v7, %v586_v8 }
 0x76f   :  { %594 = vst.msk [vmem:[#allocation5] sm:$0xff] %vm83_vm1, %v593_v9 }
 0x770   :  { %752 = shalt.err (!%p749_p9)
}
 0x771   :  { %s753_s5 = scalar_lea.hbm %s973_s14, 128 }
 0x772   :  { %p754_p10 = scmp.ne.s32.totalorder %s973_s14, %s753_s5  ;;  %p757_p11 = scmp.lt.u32.totalorder %s753_s5, %s973_s14 }
 0x774   :  { %p759_p12 = pnand %p757_p11, %p754_p10 }
 0x776   :  { %762 = shalt.err (!%p759_p12)
}
 0x777   :  { %604 = dma.vmem_to_hbm [thread:$0]  %s602_s4, 128, %s973_s14, [#allocation6]  }
 0x778   :  { %765 = dma.done.wait [#allocation6], 128  }
 0x779   :  { %766 = vsyncadd [#allocation6], 4294967168 }
 0x77a   :  { %608 = vsyncpa [#allocation6], 1 }

</bundles_post_ra>
